<compile_context>
chip_gen: v5e
topology: v5e:2x2
jax: 0.10.0
libtpu: 0.0.40
codegen_flags: <defaults>
</compile_context>

<pallas_src>
import functools

import jax
import jax.numpy as jnp
from jax.experimental import pallas as pl
from jax.experimental.pallas import tpu as pltpu

H = 32        # hidden_size
V = 64        # output_size (vocab)
L = 8         # max_length (encoder seq length)
N_LAYERS = 2  # n_layers
PACK = 128    # lane width for packed operands / output

# Weight-slab row offsets (all multiples of 8 -> tile-aligned static views).
R_TAB = 0            # rows [0, 64):   merged table  [attn_tab (V,L) | comb_tab (V,H)]
R_AWH = R_TAB + V    # rows [64, 96):  attn_wh (H, L)    hidden-side of attn linear
R_CWA = R_AWH + H    # rows [96, 128): comb_wa (H, H)    attn_applied-side of combine
R_XR = R_CWA + H     # rows [128,160): x_rows  (H, 4H)   GRU input-side fused weights
R_HR = R_XR + H      # rows [160,192): h_rows  (H, 4H)   GRU hidden-side fused weights
R_OW = R_HR + H      # rows [192,224): out_w   (H, V)
R_B = R_OW + H       # row 224: gru_b (4H) ; row 225: out_b (V) ; rows 226..231 pad
R_TOTAL = R_B + 8    # 232 rows total

ACT_ROWS = 16        # enc (L rows) + hidden + ctx, padded to 16 rows
A_ENC = 0
A_HID = L            # row 8
A_CTX = L + 1        # row 9


# --------------------------------------------------------------------------- #
# Kernel
# --------------------------------------------------------------------------- #
def decoder_kernel(idx_ref, act_ref, w_ref, out_ref):
    dot = functools.partial(jnp.dot, preferred_element_type=jnp.float32)

    idx = idx_ref[0]                              # token id (clamped in wrapper)

    enc = act_ref[A_ENC:A_ENC + L, 0:H]           # (L, H)
    hidden = act_ref[A_HID:A_HID + 1, 0:H]        # (1, H)
    ctx = act_ref[A_CTX:A_CTX + 1, 0:H]           # (1, H)

    # ---------------- attention ------------------------------------------ #
    # enc_proj is independent of the softmax -> overlaps with the logit path.
    enc_proj = dot(enc, w_ref[R_CWA:R_CWA + H, 0:H])                 # (L, H)

    # Single dynamic row read: [attn_tab | comb_tab] (embedding + bias folded in).
    tab_row = w_ref[pl.ds(R_TAB + idx, 1), :]                        # (1, 128)

    attn_logits = tab_row[:, 0:L] + dot(hidden, w_ref[R_AWH:R_AWH + H, 0:L])  # (1, L)
    m = jnp.max(attn_logits, axis=1, keepdims=True)
    e = jnp.exp(attn_logits - m)
    attn_w = e / jnp.sum(e, axis=1, keepdims=True)                   # exact reciprocal

    # combined = comb_tab[idx] + attn_w @ (enc @ comb_wa)   (re-associated tail)
    combined = tab_row[:, L:L + H] + dot(attn_w, enc_proj)           # (1, H)

    # ---------------- GRU stack ------------------------------------------ #
    x_rows = w_ref[R_XR:R_XR + H, :]    # (H, 4H)  [Wir|Wiz|Win|0]^T blocks
    h_rows = w_ref[R_HR:R_HR + H, :]    # (H, 4H)  [Whr|Whz|0|Whn]^T blocks
    gru_b = w_ref[R_B:R_B + 1, :]       # (1, 4H)  [bir+bhr|biz+bhz|bin|bhn]

    def cell(gx, h):
        # Only the h-side matmul sits on the serial dependency chain.
        g = gx + dot(h, h_rows) + gru_b                              # (1, 4H)
        r = jax.nn.sigmoid(g[:, 0:H])
        z = jax.nn.sigmoid(g[:, H:2 * H])
        n = jnp.tanh(g[:, 2 * H:3 * H] + r * g[:, 3 * H:4 * H])
        return (1.0 - z) * n + z * h

    ctx_gx = dot(ctx, x_rows)           # context x-side gates, shared by all layers

    # for i in range(n_layers): relu(output) -> cat(output, context, dim=0) -> GRU
    seq = [combined]
    h = hidden
    for _ in range(N_LAYERS):
        xs = jnp.maximum(jnp.concatenate(seq, axis=0), 0.0)          # (len, H)
        gx = dot(xs, x_rows)                                         # batched x-side pass
        new_seq = []
        for i in range(len(seq)):
            h = cell(gx[i:i + 1, :], h)
            new_seq.append(h)
        h = cell(ctx_gx, h)                                          # context element
        new_seq.append(h)
        seq = new_seq

    # ---------------- output projection + log-softmax --------------------- #
    logits = dot(seq[0], w_ref[R_OW:R_OW + H, 0:V]) + w_ref[R_B + 1:R_B + 2, 0:V]
    mm = jnp.max(logits, axis=1, keepdims=True)
    lse = jnp.log(jnp.sum(jnp.exp(logits - mm), axis=1, keepdims=True)) + mm
    logp = logits - lse

    # Lane-dense packed output: [logp (V) | hidden (H) | attn_w (L) | zero pad]
    pad = jnp.zeros((1, PACK - V - H - L), jnp.float32)
    out_ref[...] = jnp.concatenate([logp, h, attn_w, pad], axis=1)


# --------------------------------------------------------------------------- #
# Wrapper
# --------------------------------------------------------------------------- #
def attn_decoder_forward(token_idx, hidden, encoder_output, encoder_outputs,
                         context, w_slab):
    # encoder_output is accepted for signature parity but never used by the
    # reference PyTorch forward.
    del encoder_output

    # Clamp token id: Pallas does not bounds-check VMEM reads (semantic
    # difference vs PyTorch, which raises on out-of-range ids).
    token = jnp.clip(token_idx.astype(jnp.int32), 0, V - 1)

    # Pack the three small activations into one lane-dense (16, 128) slab.
    act = jnp.zeros((ACT_ROWS, PACK), jnp.float32)
    act = act.at[A_ENC:A_ENC + L, 0:H].set(encoder_outputs)
    act = act.at[A_HID, 0:H].set(hidden[0])
    act = act.at[A_CTX, 0:H].set(context[0])

    smem = pl.BlockSpec(memory_space=pltpu.MemorySpace.SMEM)
    vmem = pl.BlockSpec(memory_space=pltpu.MemorySpace.VMEM)

    packed = pl.pallas_call(
        decoder_kernel,
        out_shape=jax.ShapeDtypeStruct((1, PACK), jnp.float32),
        in_specs=[smem, vmem, vmem],
        out_specs=vmem,
    )(token, act, w_slab)

    logp = packed[:, :V]
    hid_out = packed[:, V:V + H]
    attn_w = packed[:, V + H:V + H + L]
    return logp, hid_out, attn_w


# --------------------------------------------------------------------------- #
# Parameter init (PyTorch-convention shapes) and one-time slab packing
# --------------------------------------------------------------------------- #
def init_raw_params(key):
    ks = jax.random.split(key, 11)

    def u(k, shape, fan_in):
        bound = 1.0 / float(fan_in) ** 0.5
        return jax.random.uniform(k, shape, jnp.float32, -bound, bound)

    return dict(
        emb=jax.random.normal(ks[0], (V, H), jnp.float32),   # nn.Embedding(V, H)
        attn_w=u(ks[1], (L, 2 * H), 2 * H),                  # nn.Linear(2H, L)
        attn_b=u(ks[2], (L,), 2 * H),
        comb_w=u(ks[3], (H, 2 * H), 2 * H),                  # nn.Linear(2H, H)
        comb_b=u(ks[4], (H,), 2 * H),
        w_ih=u(ks[5], (3 * H, H), H),                        # GRU weight_ih_l0 (r|z|n)
        w_hh=u(ks[6], (3 * H, H), H),                        # GRU weight_hh_l0
        b_ih=u(ks[7], (3 * H,), H),
        b_hh=u(ks[8], (3 * H,), H),
        out_w=u(ks[9], (V, H), H),                           # nn.Linear(H, V)
        out_b=u(ks[10], (V,), H),
    )


def pack_params(p):
    """Fuse / transpose / fold weights into one lane-dense (R_TOTAL, 128) slab."""
    attn_wT = p['attn_w'].T                     # (2H, L)
    attn_we, attn_wh = attn_wT[:H], attn_wT[H:]
    comb_wT = p['comb_w'].T                     # (2H, H)
    comb_we, comb_wa = comb_wT[:H], comb_wT[H:]

    # Fold embedding (and biases) into per-token tables.
    attn_tab = p['emb'] @ attn_we + p['attn_b'][None, :]    # (V, L)
    comb_tab = p['emb'] @ comb_we + p['comb_b'][None, :]    # (V, H)

    w_ih, w_hh = p['w_ih'], p['w_hh']
    zeros = jnp.zeros((H, H), jnp.float32)
    x_rows = jnp.concatenate(
        [w_ih[:H].T, w_ih[H:2 * H].T, w_ih[2 * H:].T, zeros], axis=1)   # (H, 4H)
    h_rows = jnp.concatenate(
        [w_hh[:H].T, w_hh[H:2 * H].T, zeros, w_hh[2 * H:].T], axis=1)   # (H, 4H)

    b_ih, b_hh = p['b_ih'], p['b_hh']
    gru_b = jnp.concatenate(
        [b_ih[:H] + b_hh[:H],
         b_ih[H:2 * H] + b_hh[H:2 * H],
         b_ih[2 * H:],
         b_hh[2 * H:]])                                                 # (4H,)

    slab = jnp.zeros((R_TOTAL, PACK), jnp.float32)
    slab = slab.at[R_TAB:R_TAB + V, 0:L].set(attn_tab)
    slab = slab.at[R_TAB:R_TAB + V, L:L + H].set(comb_tab)
    slab = slab.at[R_AWH:R_AWH + H, 0:L].set(attn_wh)
    slab = slab.at[R_CWA:R_CWA + H, 0:H].set(comb_wa)
    slab = slab.at[R_XR:R_XR + H, :].set(x_rows)
    slab = slab.at[R_HR:R_HR + H, :].set(h_rows)
    slab = slab.at[R_OW:R_OW + H, 0:V].set(p['out_w'].T)
    slab = slab.at[R_B, :].set(gru_b)
    slab = slab.at[R_B + 1, 0:V].set(p['out_b'])
    return slab


# --------------------------------------------------------------------------- #
# Pure-JAX reference (unfused math, mirrors the PyTorch module)
# --------------------------------------------------------------------------- #
def reference(token_idx, hidden, encoder_outputs, context, p):
    embedded = p['emb'][token_idx[0]][None, :]                          # (1, H)
    attn_logits = (jnp.concatenate([embedded, hidden], axis=1) @ p['attn_w'].T
                   + p['attn_b'][None, :])
    attn_w = jax.nn.softmax(attn_logits, axis=1)
    attn_applied = attn_w @ encoder_outputs
    combined = (jnp.concatenate([embedded, attn_applied], axis=1) @ p['comb_w'].T
                + p['comb_b'][None, :])

    def gru_cell(x, h):
        gi = x @ p['w_ih'].T + p['b_ih'][None, :]
        gh = h @ p['w_hh'].T + p['b_hh'][None, :]
        r = jax.nn.sigmoid(gi[:, :H] + gh[:, :H])
        z = jax.nn.sigmoid(gi[:, H:2 * H] + gh[:, H:2 * H])
        n = jnp.tanh(gi[:, 2 * H:] + r * gh[:, 2 * H:])
        return (1.0 - z) * n + z * h

    seq, h = [combined], hidden
    for _ in range(N_LAYERS):
        seq = [jnp.maximum(s, 0.0) for s in seq] + [context]
        new_seq = []
        for x in seq:
            h = gru_cell(x, h)
            new_seq.append(h)
        seq = new_seq

    logits = seq[0] @ p['out_w'].T + p['out_b'][None, :]
    return jax.nn.log_softmax(logits, axis=1), h, attn_w


# --------------------------------------------------------------------------- #
if __name__ == "__main__":
    key = jax.random.PRNGKey(0)
    kp, kh, ke, kc = jax.random.split(key, 4)
    raw_params = init_raw_params(kp)
    w_slab = pack_params(raw_params)

    token = jnp.array([5], dtype=jnp.int32)                        # input token id
    hidden = jax.random.normal(kh, (1, H), jnp.float32)            # hidden[0]
    encoder_output = jnp.zeros((1, H), jnp.float32)                # unused by forward
    encoder_outputs = jax.random.normal(ke, (L, H), jnp.float32)   # (max_length, H)
    context = jax.random.normal(kc, (1, H), jnp.float32)           # context[0]

    logp, hid_out, attn_w = jax.block_until_ready(
        attn_decoder_forward(token, hidden, encoder_output, encoder_outputs,
                             context, w_slab))

    r_logp, r_hid, r_attn = reference(token, hidden, encoder_outputs, context,
                                      raw_params)
    assert jnp.allclose(logp, r_logp, atol=1e-4), "log-softmax output mismatch"
    assert jnp.allclose(hid_out, r_hid, atol=1e-4), "hidden mismatch"
    assert jnp.allclose(attn_w, r_attn, atol=1e-4), "attn weights mismatch"
    print("KERNEL_OK")
</pallas_src>

<mosaic_0001>
module attributes {stable_mosaic.version = 11 : i64} {
  func.func @decoder_kernel(%arg0: memref<1xi32, #tpu.memory_space<smem>>, %arg1: memref<16x128xf32, #tpu.memory_space<vmem>>, %arg2: memref<232x128xf32, #tpu.memory_space<vmem>>, %arg3: memref<1x128xf32, #tpu.memory_space<vmem>>) attributes {dimension_semantics = [], scalar_prefetch = 0 : i64, scratch_operands = 0 : i64, tpu.core_type = #tpu.core_type<tc>} {
    %c0 = arith.constant 0 : index
    %0 = memref.load %arg0[%c0] : memref<1xi32, #tpu.memory_space<smem>>
    %c0_0 = arith.constant 0 : index
    %c0_1 = arith.constant 0 : index
    %1 = vector.load %arg1[%c0_0, %c0_1] : memref<16x128xf32, #tpu.memory_space<vmem>>, vector<8x32xf32>
    %c8 = arith.constant 8 : index
    %c0_2 = arith.constant 0 : index
    %2 = vector.load %arg1[%c8, %c0_2] : memref<16x128xf32, #tpu.memory_space<vmem>>, vector<1x32xf32>
    %c9 = arith.constant 9 : index
    %c0_3 = arith.constant 0 : index
    %3 = vector.load %arg1[%c9, %c0_3] : memref<16x128xf32, #tpu.memory_space<vmem>>, vector<1x32xf32>
    %c96 = arith.constant 96 : index
    %c0_4 = arith.constant 0 : index
    %4 = vector.load %arg2[%c96, %c0_4] : memref<232x128xf32, #tpu.memory_space<vmem>>, vector<32x32xf32>
    %cst = arith.constant dense<0.000000e+00> : vector<8x32xf32>
    %5 = tpu.matmul %1, %4, %cst {dimension_numbers = #tpu.dot_dimension_numbers<[1], [0], [0], [1], [0, 0, 1, 1], [], []>} : vector<8x32xf32>, vector<32x32xf32>, vector<8x32xf32> -> vector<8x32xf32>
    %c0_i32 = arith.constant 0 : i32
    %6 = arith.addi %c0_i32, %0 : i32
    %7 = arith.index_cast %6 : i32 to index
    %c0_5 = arith.constant 0 : index
    %8 = vector.load %arg2[%7, %c0_5] : memref<232x128xf32, #tpu.memory_space<vmem>>, vector<1x128xf32>
    %9 = vector.extract_strided_slice %8 {offsets = [0, 0], sizes = [1, 8], strides = [1, 1]} : vector<1x128xf32> to vector<1x8xf32>
    %c64 = arith.constant 64 : index
    %c0_6 = arith.constant 0 : index
    %10 = vector.load %arg2[%c64, %c0_6] : memref<232x128xf32, #tpu.memory_space<vmem>>, vector<32x8xf32>
    %cst_7 = arith.constant dense<0.000000e+00> : vector<1x8xf32>
    %11 = tpu.matmul %2, %10, %cst_7 {dimension_numbers = #tpu.dot_dimension_numbers<[1], [0], [0], [1], [0, 0, 1, 1], [], []>} : vector<1x32xf32>, vector<32x8xf32>, vector<1x8xf32> -> vector<1x8xf32>
    %12 = arith.addf %9, %11 : vector<1x8xf32>
    %cst_8 = arith.constant dense<0xFF800000> : vector<1xf32>
    %13 = vector.multi_reduction <maximumf>, %12, %cst_8 [1] : vector<1x8xf32> to vector<1xf32>
    %14 = vector.shape_cast %13 : vector<1xf32> to vector<1x1xf32>
    %15 = vector.broadcast %14 : vector<1x1xf32> to vector<1x8xf32>
    %16 = arith.subf %12, %15 : vector<1x8xf32>
    %17 = math.exp %16 : vector<1x8xf32>
    %cst_9 = arith.constant dense<0.000000e+00> : vector<1xf32>
    %18 = vector.multi_reduction <add>, %17, %cst_9 [1] : vector<1x8xf32> to vector<1xf32>
    %19 = vector.shape_cast %18 : vector<1xf32> to vector<1x1xf32>
    %20 = vector.broadcast %19 : vector<1x1xf32> to vector<1x8xf32>
    %21 = arith.divf %17, %20 : vector<1x8xf32>
    %22 = vector.extract_strided_slice %8 {offsets = [0, 8], sizes = [1, 32], strides = [1, 1]} : vector<1x128xf32> to vector<1x32xf32>
    %cst_10 = arith.constant dense<0.000000e+00> : vector<1x32xf32>
    %23 = tpu.matmul %21, %5, %cst_10 {dimension_numbers = #tpu.dot_dimension_numbers<[1], [0], [0], [1], [0, 0, 1, 1], [], []>} : vector<1x8xf32>, vector<8x32xf32>, vector<1x32xf32> -> vector<1x32xf32>
    %24 = arith.addf %22, %23 : vector<1x32xf32>
    %c128 = arith.constant 128 : index
    %c0_11 = arith.constant 0 : index
    %25 = vector.load %arg2[%c128, %c0_11] : memref<232x128xf32, #tpu.memory_space<vmem>>, vector<32x128xf32>
    %c160 = arith.constant 160 : index
    %c0_12 = arith.constant 0 : index
    %26 = vector.load %arg2[%c160, %c0_12] : memref<232x128xf32, #tpu.memory_space<vmem>>, vector<32x128xf32>
    %c224 = arith.constant 224 : index
    %c0_13 = arith.constant 0 : index
    %27 = vector.load %arg2[%c224, %c0_13] : memref<232x128xf32, #tpu.memory_space<vmem>>, vector<1x128xf32>
    %cst_14 = arith.constant dense<0.000000e+00> : vector<1x128xf32>
    %28 = tpu.matmul %3, %25, %cst_14 {dimension_numbers = #tpu.dot_dimension_numbers<[1], [0], [0], [1], [0, 0, 1, 1], [], []>} : vector<1x32xf32>, vector<32x128xf32>, vector<1x128xf32> -> vector<1x128xf32>
    %cst_15 = arith.constant 0.000000e+00 : f32
    %29 = vector.broadcast %cst_15 : f32 to vector<1x32xf32>
    %30 = arith.maximumf %24, %29 : vector<1x32xf32>
    %cst_16 = arith.constant dense<0.000000e+00> : vector<1x128xf32>
    %31 = tpu.matmul %30, %25, %cst_16 {dimension_numbers = #tpu.dot_dimension_numbers<[1], [0], [0], [1], [0, 0, 1, 1], [], []>} : vector<1x32xf32>, vector<32x128xf32>, vector<1x128xf32> -> vector<1x128xf32>
    %cst_17 = arith.constant dense<0.000000e+00> : vector<1x128xf32>
    %32 = tpu.matmul %2, %26, %cst_17 {dimension_numbers = #tpu.dot_dimension_numbers<[1], [0], [0], [1], [0, 0, 1, 1], [], []>} : vector<1x32xf32>, vector<32x128xf32>, vector<1x128xf32> -> vector<1x128xf32>
    %33 = arith.addf %31, %32 : vector<1x128xf32>
    %34 = arith.addf %33, %27 : vector<1x128xf32>
    %35 = vector.extract_strided_slice %34 {offsets = [0, 0], sizes = [1, 32], strides = [1, 1]} : vector<1x128xf32> to vector<1x32xf32>
    %36 = arith.negf %35 : vector<1x32xf32>
    %37 = math.exp %36 : vector<1x32xf32>
    %cst_18 = arith.constant 1.000000e+00 : f32
    %38 = vector.broadcast %cst_18 : f32 to vector<1x32xf32>
    %39 = arith.addf %38, %37 : vector<1x32xf32>
    %40 = arith.divf %38, %39 : vector<1x32xf32>
    %41 = vector.extract_strided_slice %34 {offsets = [0, 32], sizes = [1, 32], strides = [1, 1]} : vector<1x128xf32> to vector<1x32xf32>
    %42 = arith.negf %41 : vector<1x32xf32>
    %43 = math.exp %42 : vector<1x32xf32>
    %cst_19 = arith.constant 1.000000e+00 : f32
    %44 = vector.broadcast %cst_19 : f32 to vector<1x32xf32>
    %45 = arith.addf %44, %43 : vector<1x32xf32>
    %46 = arith.divf %44, %45 : vector<1x32xf32>
    %47 = vector.extract_strided_slice %34 {offsets = [0, 64], sizes = [1, 32], strides = [1, 1]} : vector<1x128xf32> to vector<1x32xf32>
    %48 = vector.extract_strided_slice %34 {offsets = [0, 96], sizes = [1, 32], strides = [1, 1]} : vector<1x128xf32> to vector<1x32xf32>
    %49 = arith.mulf %40, %48 : vector<1x32xf32>
    %50 = arith.addf %47, %49 : vector<1x32xf32>
    %51 = math.tanh %50 : vector<1x32xf32>
    %cst_20 = arith.constant 1.000000e+00 : f32
    %52 = vector.broadcast %cst_20 : f32 to vector<1x32xf32>
    %53 = arith.subf %52, %46 : vector<1x32xf32>
    %54 = arith.mulf %53, %51 : vector<1x32xf32>
    %55 = arith.mulf %46, %2 : vector<1x32xf32>
    %56 = arith.addf %54, %55 : vector<1x32xf32>
    %cst_21 = arith.constant dense<0.000000e+00> : vector<1x128xf32>
    %57 = tpu.matmul %56, %26, %cst_21 {dimension_numbers = #tpu.dot_dimension_numbers<[1], [0], [0], [1], [0, 0, 1, 1], [], []>} : vector<1x32xf32>, vector<32x128xf32>, vector<1x128xf32> -> vector<1x128xf32>
    %58 = arith.addf %28, %57 : vector<1x128xf32>
    %59 = arith.addf %58, %27 : vector<1x128xf32>
    %60 = vector.extract_strided_slice %59 {offsets = [0, 0], sizes = [1, 32], strides = [1, 1]} : vector<1x128xf32> to vector<1x32xf32>
    %61 = arith.negf %60 : vector<1x32xf32>
    %62 = math.exp %61 : vector<1x32xf32>
    %cst_22 = arith.constant 1.000000e+00 : f32
    %63 = vector.broadcast %cst_22 : f32 to vector<1x32xf32>
    %64 = arith.addf %63, %62 : vector<1x32xf32>
    %65 = arith.divf %63, %64 : vector<1x32xf32>
    %66 = vector.extract_strided_slice %59 {offsets = [0, 32], sizes = [1, 32], strides = [1, 1]} : vector<1x128xf32> to vector<1x32xf32>
    %67 = arith.negf %66 : vector<1x32xf32>
    %68 = math.exp %67 : vector<1x32xf32>
    %cst_23 = arith.constant 1.000000e+00 : f32
    %69 = vector.broadcast %cst_23 : f32 to vector<1x32xf32>
    %70 = arith.addf %69, %68 : vector<1x32xf32>
    %71 = arith.divf %69, %70 : vector<1x32xf32>
    %72 = vector.extract_strided_slice %59 {offsets = [0, 64], sizes = [1, 32], strides = [1, 1]} : vector<1x128xf32> to vector<1x32xf32>
    %73 = vector.extract_strided_slice %59 {offsets = [0, 96], sizes = [1, 32], strides = [1, 1]} : vector<1x128xf32> to vector<1x32xf32>
    %74 = arith.mulf %65, %73 : vector<1x32xf32>
    %75 = arith.addf %72, %74 : vector<1x32xf32>
    %76 = math.tanh %75 : vector<1x32xf32>
    %cst_24 = arith.constant 1.000000e+00 : f32
    %77 = vector.broadcast %cst_24 : f32 to vector<1x32xf32>
    %78 = arith.subf %77, %71 : vector<1x32xf32>
    %79 = arith.mulf %78, %76 : vector<1x32xf32>
    %80 = arith.mulf %71, %56 : vector<1x32xf32>
    %81 = arith.addf %79, %80 : vector<1x32xf32>
    %82 = tpu.concatenate %56, %81 in 0 : vector<1x32xf32>, vector<1x32xf32> -> vector<2x32xf32>
    %cst_25 = arith.constant 0.000000e+00 : f32
    %83 = vector.broadcast %cst_25 : f32 to vector<2x32xf32>
    %84 = arith.maximumf %82, %83 : vector<2x32xf32>
    %cst_26 = arith.constant dense<0.000000e+00> : vector<2x128xf32>
    %85 = tpu.matmul %84, %25, %cst_26 {dimension_numbers = #tpu.dot_dimension_numbers<[1], [0], [0], [1], [0, 0, 1, 1], [], []>} : vector<2x32xf32>, vector<32x128xf32>, vector<2x128xf32> -> vector<2x128xf32>
    %86 = vector.extract_strided_slice %85 {offsets = [0, 0], sizes = [1, 128], strides = [1, 1]} : vector<2x128xf32> to vector<1x128xf32>
    %cst_27 = arith.constant dense<0.000000e+00> : vector<1x128xf32>
    %87 = tpu.matmul %81, %26, %cst_27 {dimension_numbers = #tpu.dot_dimension_numbers<[1], [0], [0], [1], [0, 0, 1, 1], [], []>} : vector<1x32xf32>, vector<32x128xf32>, vector<1x128xf32> -> vector<1x128xf32>
    %88 = arith.addf %86, %87 : vector<1x128xf32>
    %89 = arith.addf %88, %27 : vector<1x128xf32>
    %90 = vector.extract_strided_slice %89 {offsets = [0, 0], sizes = [1, 32], strides = [1, 1]} : vector<1x128xf32> to vector<1x32xf32>
    %91 = arith.negf %90 : vector<1x32xf32>
    %92 = math.exp %91 : vector<1x32xf32>
    %cst_28 = arith.constant 1.000000e+00 : f32
    %93 = vector.broadcast %cst_28 : f32 to vector<1x32xf32>
    %94 = arith.addf %93, %92 : vector<1x32xf32>
    %95 = arith.divf %93, %94 : vector<1x32xf32>
    %96 = vector.extract_strided_slice %89 {offsets = [0, 32], sizes = [1, 32], strides = [1, 1]} : vector<1x128xf32> to vector<1x32xf32>
    %97 = arith.negf %96 : vector<1x32xf32>
    %98 = math.exp %97 : vector<1x32xf32>
    %cst_29 = arith.constant 1.000000e+00 : f32
    %99 = vector.broadcast %cst_29 : f32 to vector<1x32xf32>
    %100 = arith.addf %99, %98 : vector<1x32xf32>
    %101 = arith.divf %99, %100 : vector<1x32xf32>
    %102 = vector.extract_strided_slice %89 {offsets = [0, 64], sizes = [1, 32], strides = [1, 1]} : vector<1x128xf32> to vector<1x32xf32>
    %103 = vector.extract_strided_slice %89 {offsets = [0, 96], sizes = [1, 32], strides = [1, 1]} : vector<1x128xf32> to vector<1x32xf32>
    %104 = arith.mulf %95, %103 : vector<1x32xf32>
    %105 = arith.addf %102, %104 : vector<1x32xf32>
    %106 = math.tanh %105 : vector<1x32xf32>
    %cst_30 = arith.constant 1.000000e+00 : f32
    %107 = vector.broadcast %cst_30 : f32 to vector<1x32xf32>
    %108 = arith.subf %107, %101 : vector<1x32xf32>
    %109 = arith.mulf %108, %106 : vector<1x32xf32>
    %110 = arith.mulf %101, %81 : vector<1x32xf32>
    %111 = arith.addf %109, %110 : vector<1x32xf32>
    %112 = vector.extract_strided_slice %85 {offsets = [1, 0], sizes = [1, 128], strides = [1, 1]} : vector<2x128xf32> to vector<1x128xf32>
    %cst_31 = arith.constant dense<0.000000e+00> : vector<1x128xf32>
    %113 = tpu.matmul %111, %26, %cst_31 {dimension_numbers = #tpu.dot_dimension_numbers<[1], [0], [0], [1], [0, 0, 1, 1], [], []>} : vector<1x32xf32>, vector<32x128xf32>, vector<1x128xf32> -> vector<1x128xf32>
    %114 = arith.addf %112, %113 : vector<1x128xf32>
    %115 = arith.addf %114, %27 : vector<1x128xf32>
    %116 = vector.extract_strided_slice %115 {offsets = [0, 0], sizes = [1, 32], strides = [1, 1]} : vector<1x128xf32> to vector<1x32xf32>
    %117 = arith.negf %116 : vector<1x32xf32>
    %118 = math.exp %117 : vector<1x32xf32>
    %cst_32 = arith.constant 1.000000e+00 : f32
    %119 = vector.broadcast %cst_32 : f32 to vector<1x32xf32>
    %120 = arith.addf %119, %118 : vector<1x32xf32>
    %121 = arith.divf %119, %120 : vector<1x32xf32>
    %122 = vector.extract_strided_slice %115 {offsets = [0, 32], sizes = [1, 32], strides = [1, 1]} : vector<1x128xf32> to vector<1x32xf32>
    %123 = arith.negf %122 : vector<1x32xf32>
    %124 = math.exp %123 : vector<1x32xf32>
    %cst_33 = arith.constant 1.000000e+00 : f32
    %125 = vector.broadcast %cst_33 : f32 to vector<1x32xf32>
    %126 = arith.addf %125, %124 : vector<1x32xf32>
    %127 = arith.divf %125, %126 : vector<1x32xf32>
    %128 = vector.extract_strided_slice %115 {offsets = [0, 64], sizes = [1, 32], strides = [1, 1]} : vector<1x128xf32> to vector<1x32xf32>
    %129 = vector.extract_strided_slice %115 {offsets = [0, 96], sizes = [1, 32], strides = [1, 1]} : vector<1x128xf32> to vector<1x32xf32>
    %130 = arith.mulf %121, %129 : vector<1x32xf32>
    %131 = arith.addf %128, %130 : vector<1x32xf32>
    %132 = math.tanh %131 : vector<1x32xf32>
    %cst_34 = arith.constant 1.000000e+00 : f32
    %133 = vector.broadcast %cst_34 : f32 to vector<1x32xf32>
    %134 = arith.subf %133, %127 : vector<1x32xf32>
    %135 = arith.mulf %134, %132 : vector<1x32xf32>
    %136 = arith.mulf %127, %111 : vector<1x32xf32>
    %137 = arith.addf %135, %136 : vector<1x32xf32>
    %cst_35 = arith.constant dense<0.000000e+00> : vector<1x128xf32>
    %138 = tpu.matmul %137, %26, %cst_35 {dimension_numbers = #tpu.dot_dimension_numbers<[1], [0], [0], [1], [0, 0, 1, 1], [], []>} : vector<1x32xf32>, vector<32x128xf32>, vector<1x128xf32> -> vector<1x128xf32>
    %139 = arith.addf %28, %138 : vector<1x128xf32>
    %140 = arith.addf %139, %27 : vector<1x128xf32>
    %141 = vector.extract_strided_slice %140 {offsets = [0, 0], sizes = [1, 32], strides = [1, 1]} : vector<1x128xf32> to vector<1x32xf32>
    %142 = arith.negf %141 : vector<1x32xf32>
    %143 = math.exp %142 : vector<1x32xf32>
    %cst_36 = arith.constant 1.000000e+00 : f32
    %144 = vector.broadcast %cst_36 : f32 to vector<1x32xf32>
    %145 = arith.addf %144, %143 : vector<1x32xf32>
    %146 = arith.divf %144, %145 : vector<1x32xf32>
    %147 = vector.extract_strided_slice %140 {offsets = [0, 32], sizes = [1, 32], strides = [1, 1]} : vector<1x128xf32> to vector<1x32xf32>
    %148 = arith.negf %147 : vector<1x32xf32>
    %149 = math.exp %148 : vector<1x32xf32>
    %cst_37 = arith.constant 1.000000e+00 : f32
    %150 = vector.broadcast %cst_37 : f32 to vector<1x32xf32>
    %151 = arith.addf %150, %149 : vector<1x32xf32>
    %152 = arith.divf %150, %151 : vector<1x32xf32>
    %153 = vector.extract_strided_slice %140 {offsets = [0, 64], sizes = [1, 32], strides = [1, 1]} : vector<1x128xf32> to vector<1x32xf32>
    %154 = vector.extract_strided_slice %140 {offsets = [0, 96], sizes = [1, 32], strides = [1, 1]} : vector<1x128xf32> to vector<1x32xf32>
    %155 = arith.mulf %146, %154 : vector<1x32xf32>
    %156 = arith.addf %153, %155 : vector<1x32xf32>
    %157 = math.tanh %156 : vector<1x32xf32>
    %cst_38 = arith.constant 1.000000e+00 : f32
    %158 = vector.broadcast %cst_38 : f32 to vector<1x32xf32>
    %159 = arith.subf %158, %152 : vector<1x32xf32>
    %160 = arith.mulf %159, %157 : vector<1x32xf32>
    %161 = arith.mulf %152, %137 : vector<1x32xf32>
    %162 = arith.addf %160, %161 : vector<1x32xf32>
    %c192 = arith.constant 192 : index
    %c0_39 = arith.constant 0 : index
    %163 = vector.load %arg2[%c192, %c0_39] : memref<232x128xf32, #tpu.memory_space<vmem>>, vector<32x64xf32>
    %cst_40 = arith.constant dense<0.000000e+00> : vector<1x64xf32>
    %164 = tpu.matmul %111, %163, %cst_40 {dimension_numbers = #tpu.dot_dimension_numbers<[1], [0], [0], [1], [0, 0, 1, 1], [], []>} : vector<1x32xf32>, vector<32x64xf32>, vector<1x64xf32> -> vector<1x64xf32>
    %c225 = arith.constant 225 : index
    %c0_41 = arith.constant 0 : index
    %165 = vector.load %arg2[%c225, %c0_41] : memref<232x128xf32, #tpu.memory_space<vmem>>, vector<1x64xf32>
    %166 = arith.addf %164, %165 : vector<1x64xf32>
    %cst_42 = arith.constant dense<0xFF800000> : vector<1xf32>
    %167 = vector.multi_reduction <maximumf>, %166, %cst_42 [1] : vector<1x64xf32> to vector<1xf32>
    %168 = vector.shape_cast %167 : vector<1xf32> to vector<1x1xf32>
    %169 = vector.broadcast %168 : vector<1x1xf32> to vector<1x64xf32>
    %170 = arith.subf %166, %169 : vector<1x64xf32>
    %171 = math.exp %170 : vector<1x64xf32>
    %cst_43 = arith.constant dense<0.000000e+00> : vector<1xf32>
    %172 = vector.multi_reduction <add>, %171, %cst_43 [1] : vector<1x64xf32> to vector<1xf32>
    %173 = vector.shape_cast %172 : vector<1xf32> to vector<1x1xf32>
    %174 = math.log %173 : vector<1x1xf32>
    %175 = arith.addf %174, %168 : vector<1x1xf32>
    %176 = vector.broadcast %175 : vector<1x1xf32> to vector<1x64xf32>
    %177 = arith.subf %166, %176 : vector<1x64xf32>
    %cst_44 = arith.constant 0.000000e+00 : f32
    %178 = vector.broadcast %cst_44 : f32 to vector<1x24xf32>
    %179 = tpu.concatenate %177, %162, %21, %178 in 1 : vector<1x64xf32>, vector<1x32xf32>, vector<1x8xf32>, vector<1x24xf32> -> vector<1x128xf32>
    %c0_45 = arith.constant 0 : index
    %c0_46 = arith.constant 0 : index
    %180 = vector.load %arg3[%c0_45, %c0_46] : memref<1x128xf32, #tpu.memory_space<vmem>>, vector<1x128xf32>
    tpu.vector_store %arg3[%c0_45, %c0_46], %179 {strides = array<i32>} : memref<1x128xf32, #tpu.memory_space<vmem>>, vector<1x128xf32>,
    return
  }
}

</mosaic_0001>

<bundles_post_ra>
// kernel: tpu_custom_call.1
= control target key start
LH: loop header
LB: loop body
LE: loop exit
PB: predicated region body
PF: predicated region fallthrough
CT: control target
= control target key end

     0   :  { %9 = vsyncpa [#allocation4], 0  ;;  %s909_s0 = inlined_call_operand.<no memory space> [shape: s32[1], index: 0, kind: input, shape index: {}]   ;;  %s910_s1 = inlined_call_operand.hbm [shape: f32[16,128], index: 1, kind: input, shape index: {}]   ;;  %s911_s2 = inlined_call_operand.hbm [shape: f32[232,128], index: 2, kind: input, shape index: {}]   ;;  %s912_s3 = inlined_call_operand.hbm [shape: f32[1,128], index: 3, kind: output, shape index: {}]  }
   0x1   :  { %10 = vsyncpa [#allocation7], 0 }
   0x2   :  { %11 = vsyncpa [#allocation5], 0  ;;  %s18_s14 = sshll.u32 %s910_s1, 4  ;;  %s798_s15 = smov [#allocation3]   ;;  %s19_s14 = int_to_ptr.hbm [resolvable:$true] %s18_s14 }
   0x3   :  { %s20_s16 = sshll.u32 %s798_s15, 4  ;;  %s31_s19 = sshll.u32 %s911_s2, 4  ;;  %s21_s16 = int_to_ptr.vmem [resolvable:$true] %s20_s16  ;;  %s32_s19 = int_to_ptr.hbm [resolvable:$true] %s31_s19 }
   0x4   :  { %s799_s20 = smov 128   ;;  %s800_s21 = smov 8  }
   0x5   :  { %26 = dma.hbm_to_vmem [thread:$0]  %s19_s14, 256, %s21_s16, [#allocation4], %s799_s20, %s799_s20, %s800_s21  }
   0x6   :  { %s801_s22 = smov [#allocation6]  }
   0x7   :  { %s33_s23 = sshll.u32 %s801_s22, 4  ;;  %s34_s23 = int_to_ptr.vmem [resolvable:$true] %s33_s23 }
   0x8   :  { %39 = dma.hbm_to_vmem [thread:$0]  %s32_s19, 3712, %s34_s23, [#allocation7], %s799_s20, %s799_s20, %s800_s21  }
   0x9   :  { %792 = dma.done.wait [#allocation4], 256  }
   0xa   :  { %793 = vsyncadd [#allocation4], 4294967040 }
   0xb   :  { %794 = dma.done.wait [#allocation7], 3712  }
   0xc   :  { %795 = vsyncadd [#allocation7], 4294963584  ;;  %v85_v0 = vld [vmem:[#allocation6 + $0x58] sm:$0xff]  ;;  %v84_v1 = vld [vmem:[#allocation6 + $0x50] sm:$0xff]  ;;  %vm56_vm0 = vcmask 261120   ;;  %s80_s24 = scalar_lea.vmem [#allocation6], %s909_s0 }
   0xd   :  { %101 = vmatpush.msra.mxu1 %v85_v0  ;;  %v83_v2 = vld [vmem:[#allocation6 + $0x48] sm:$0xff]  ;;  %v82_v3 = vld [vmem:[#allocation6 + $0x40] sm:$0xff]  ;;  %v835_v4 = vld [vmem:[#allocation3 + $0x8] sm:$0x1]  ;;  %vm110_vm1 = vcmask 57344   ;;  %vm135_vm6 = vcmask 64512  }
   0xe   :  { %v842_v5 = vld [vmem:[%s80_s24] sm:$0x1]  ;;  %v55_v9 = vld [vmem:[#allocation6 + $0x78] sm:$0xff]  ;;  %v53_v11 = vld [vmem:[#allocation6 + $0x68] sm:$0xff]  ;;  %s802_s0 = smov 120   ;;  %s803_s25 = smov 32  }
   0xf   :  { %102 = vmatpush.msra.mxu1 %v84_v1  ;;  %v54_v10 = vld [vmem:[#allocation6 + $0x70] sm:$0xff]  ;;  %72 = vmatpush.msra.mxu0 %v55_v9  ;;  %v52_v12 = vld [vmem:[#allocation6 + $0x60] sm:$0xff]  ;;  %v171_v33 = vld [vmem:[#allocation6 + $0xb8] sm:$0xff]  ;;  %s804_s26 = smov 64   ;;  %s805_s27 = smov 96   ;;  %vm352_vm15 = vcmask 1040384  }
  0x10   :  { %v49_v13 = vld [vmem:[#allocation3] sm:$0xff]  ;;  %v167_v35 = vld [vmem:[#allocation6 + $0x98] sm:$0xff]  ;;  %v169_v37 = vld [vmem:[#allocation6 + $0xa8] sm:$0xff]  ;;  %s806_s28 = smov [#allocation8]   ;;  %s644_s5 = sshll.u32 %s912_s3, 4  ;;  %s645_s5 = int_to_ptr.hbm [resolvable:$true] %s644_s5 }
  0x11   :  { %103 = vmatpush.msra.mxu1 %v83_v2  ;;  %73 = vmatpush.msra.mxu0 %v54_v10  ;;  %v170_v34 = vld [vmem:[#allocation6 + $0xb0] sm:$0xff]  ;;  %v165_v38 = vld [vmem:[#allocation6 + $0x88] sm:$0xff]  ;;  %v168_v39 = vld [vmem:[#allocation6 + $0xa0] sm:$0xff]  ;;  %s642_s29 = sshll.u32 %s806_s28, 4  ;;  %s643_s29 = int_to_ptr.vmem [resolvable:$true] %s642_s29 }
  0x12   :  { %v166_v36 = vld [vmem:[#allocation6 + $0x90] sm:$0xff]  ;;  %188 = vmatpush.msra.mxu3 %v167_v35  ;;  %v164_v40 = vld [vmem:[#allocation6 + $0x80] sm:$0xff] }
  0x13   :  { %104 = vmatpush.msra.mxu1 %v82_v3  ;;  %74 = vmatpush.msra.mxu0 %v53_v11  ;;  %v858_v46 = vld [vmem:[#allocation6 + $0xe0] sm:$0x1] }
  0x14   :  { %657 = vmatmul.msk.f32.vlgmr.msra.gmra.mxu1 %vm56_vm0, %v835_v4  ;;  %189 = vmatpush.msra.mxu3 %v166_v36 }
  0x15   :  { %75 = vmatpush.msra.mxu0 %v52_v12  ;;  %301 = vmatpush.msrb.mxu1 %v171_v33 }
  0x16   :  { %656 = vmatmul.msk.f32.vlgmr.msra.gmra.mxu0 %vm56_vm0, %v49_v13  ;;  %190 = vmatpush.msra.mxu3 %v165_v38 }
  0x17   :  { %234 = vmatpush.msrb.mxu0 %v167_v35  ;;  %302 = vmatpush.msrb.mxu1 %v170_v34 }
  0x18   :  { %191 = vmatpush.msra.mxu3 %v164_v40 }
  0x19   :  { %235 = vmatpush.msrb.mxu0 %v166_v36  ;;  %303 = vmatpush.msrb.mxu1 %v169_v37 }
  0x1a   :  { %372 = vmatpush.msrb.mxu3 %v167_v35 }
  0x1b   :  { %236 = vmatpush.msrb.mxu0 %v165_v38  ;;  %304 = vmatpush.msrb.mxu1 %v168_v39 }
  0x1c   :  { %373 = vmatpush.msrb.mxu3 %v166_v36 }
  0x1d   :  { %237 = vmatpush.msrb.mxu0 %v164_v40  ;;  %535 = vmatpush.msra.mxu1 %v171_v33 }
  0x1e   :  { %374 = vmatpush.msrb.mxu3 %v165_v38 }
  0x1f   :  { %461 = vmatpush.msra.mxu0 %v171_v33  ;;  %536 = vmatpush.msra.mxu1 %v170_v34 }
  0x20   :  { %375 = vmatpush.msrb.mxu3 %v164_v40 }
  0x21   :  { %462 = vmatpush.msra.mxu0 %v170_v34  ;;  %537 = vmatpush.msra.mxu1 %v169_v37 }
  0x23   :  { %463 = vmatpush.msra.mxu0 %v169_v37  ;;  %538 = vmatpush.msra.mxu1 %v168_v39 }
  0x25   :  { %464 = vmatpush.msra.mxu0 %v168_v39 }
  0x91   :  { %v106_v6 = vpop.f32.mrf.mxu1 }
  0x92   :  { %v109_v7 = vadd.f32 %v106_v6, %v842_v5 }
  0x93   :  { %v77_v19 = vpop.f32.mrf.mxu0 }
  0x94   :  { %v111_v8 = vsel %vm110_vm1, %v109_v7, -inf  ;;  %154 = vmatpush.msra.mxu2 %v77_v19 }
  0x95   :  { %112 = vmax.xlane.f32.xlu0 %v111_v8 }
  0x96   :  { %209 = vmatpush.msrb.mxu2 %v171_v33 }
  0x98   :  { %210 = vmatpush.msrb.mxu2 %v170_v34 }
  0x9a   :  { %211 = vmatpush.msrb.mxu2 %v169_v37 }
  0x9c   :  { %212 = vmatpush.msrb.mxu2 %v168_v39 }
 0x108   :  { %v113_v14 = vpop.xlane.xlu0 %112 }
 0x109   :  { %v114_v15 = vsub.f32 %v109_v7, %v113_v14 }
 0x10b   :  { %v115_v16 = vmul.f32 1.442695, %v114_v15 }
 0x10d   :  { %682 = vpow2.f32 %v115_v16 }
 0x113   :  { %v683_v17 = vpop.eup %682 }
 0x114   :  { %v117_v18 = vsel %vm110_vm1, %v683_v17, 0.0 }
 0x115   :  { %118 = vadd.xlane.f32.xlu0 %v117_v18 }
 0x188   :  { %v119_v20 = vpop.xlane.xlu0 %118 }
 0x189   :  { %684 = vrcp.f32 %v119_v20  ;;  %v131_v24 = vand.u32 2147483648, %v119_v20  ;;  %v129_v26 = vand.u32 2147483647, %v119_v20  ;;  %vm125_vm3 = vweird.f32 %v119_v20 }
 0x18b   :  { %v132_v28 = vor.u32 1.1754944e-38, %v131_v24  ;;  %vm130_vm5 = vcmp.eq.f32.partialorder %v129_v26, 8.507059e+37 }
 0x18f   :  { %v685_v21 = vpop.eup %684 }
 0x190   :  { %v121_v22 = vmul.f32 %v685_v21, %v119_v20  ;;  %vm126_vm2 = vweird.f32 %v685_v21 }
 0x191   :  { %vm127_vm4 = vmor %vm125_vm3, %vm126_vm2 }
 0x192   :  { %v122_v23 = vsub.f32 1.0, %v121_v22 }
 0x194   :  { %v123_v25 = vmul.f32 %v685_v21, %v122_v23 }
 0x196   :  { %v124_v27 = vadd.f32 %v685_v21, %v123_v25 }
 0x198   :  { %v128_v29 = vsel %vm127_vm4, %v685_v21, %v124_v27 }
 0x199   :  { %v133_v30 = vsel %vm130_vm5, %v132_v28, %v128_v29 }
 0x19a   :  { %v848_v31 = vmul.f32 %v683_v17, %v133_v30 }
 0x19c   :  { %658 = vmatmul.msk.f32.vlgmr.msra.gmra.mxu2 %vm135_vm6, %v848_v31 }
 0x19d   :  { %396 = vmatpush.msra.mxu2 %v171_v33 }
 0x19f   :  { %397 = vmatpush.msra.mxu2 %v170_v34 }
 0x1a1   :  { %398 = vmatpush.msra.mxu2 %v169_v37 }
 0x1a3   :  { %399 = vmatpush.msra.mxu2 %v168_v39 }
 0x1a4   :  { %660 = vmatmul.msk.f32.vlgmr.msrb.gmra.mxu2 %vm56_vm0, %v835_v4 }
 0x21f   :  { %v156_v32 = vpop.f32.mrf.mxu2 }
 0x220   :  { %160 = vrot.lane.b32.xlu1 %v156_v32, %s800_s21 }
 0x227   :  { %v214_v45 = vpop.f32.mrf.mxu2 }
 0x292   :  { %v161_v41 = vpop.permute.xlu1 %160 }
 0x293   :  { %v163_v42 = vadd.f32 %v161_v41, %v842_v5 }
 0x295   :  { %v196_v43 = vmax.f32 %v163_v42, 0.0 }
 0x297   :  { %218 = vrot.lane.b32.xlu1 %v196_v43, %s802_s0 }
 0x29f   :  { %279 = vrot.lane.b32.xlu1 %v835_v4, %s803_s25  ;;  %v51_v4 = vld [vmem:[#allocation3 + $0x9] sm:$0x1] }
 0x2a0   :  { %659 = vmatmul.msk.f32.vlgmr.msra.gmra.mxu3 %vm56_vm0, %v51_v4  ;;  %v587_v4 = vld [vmem:[#allocation6 + $0xd8] sm:$0xff] }
 0x2a1   :  { %601 = vmatpush.msra.mxu3 %v587_v4 }
 0x309   :  { %v219_v44 = vpop.permute.xlu1 %218 }
 0x30a   :  { %661 = vmatmul.msk.f32.vlgmr.msrb.gmra.mxu0 %vm56_vm0, %v219_v44 }
 0x311   :  { %v280_v5 = vpop.permute.xlu1 %279 }
 0x323   :  { %v867_v12 = vpop.f32.mrf.mxu3 }
 0x387   :  { %v239_v47 = vpop.f32.mrf.mxu0 }
 0x388   :  { %v240_v48 = vadd.f32 %v239_v47, %v214_v45 }
 0x38a   :  { %v242_v49 = vadd.f32 %v240_v48, %v858_v46 }
 0x38c   :  { %263 = vrot.lane.b32.xlu2 %v242_v49, %s803_s25  ;;  %v662_v50 = vmul.f32 -1.442695, %v242_v49 }
 0x38e   :  { %686 = vpow2.f32 %v662_v50 }
 0x394   :  { %v687_v51 = vpop.eup %686 }
 0x395   :  { %v246_v52 = vadd.f32 1.0, %v687_v51 }
 0x397   :  { %688 = vrcp.f32 %v246_v52  ;;  %v258_v58 = vand.u32 2147483648, %v246_v52  ;;  %vm252_vm8 = vweird.f32 %v246_v52  ;;  %v256_v59 = vand.u32 2147483647, %v246_v52 }
 0x399   :  { %v259_v61 = vor.u32 1.1754944e-38, %v258_v58  ;;  %vm257_vm10 = vcmp.eq.f32.partialorder %v256_v59, 8.507059e+37 }
 0x39d   :  { %v689_v53 = vpop.eup %688 }
 0x39e   :  { %v248_v54 = vmul.f32 %v689_v53, %v246_v52  ;;  %vm253_vm7 = vweird.f32 %v689_v53 }
 0x39f   :  { %vm254_vm9 = vmor %vm252_vm8, %vm253_vm7 }
 0x3a0   :  { %v249_v55 = vsub.f32 1.0, %v248_v54 }
 0x3a2   :  { %v250_v56 = vmul.f32 %v689_v53, %v249_v55 }
 0x3a4   :  { %v251_v57 = vadd.f32 %v689_v53, %v250_v56 }
 0x3a6   :  { %v255_v60 = vsel %vm254_vm9, %v689_v53, %v251_v57  ;;  %vm609_vm9 = vcmask 516096  }
 0x3a7   :  { %v260_v62 = vsel %vm257_vm10, %v259_v61, %v255_v60 }
 0x3a8   :  { %v273_v6 = vsub.f32 1.0, %v260_v62  ;;  %v282_v8 = vmul.f32 %v280_v5, %v260_v62  ;;  %v586_v5 = vld [vmem:[#allocation6 + $0xd0] sm:$0xff] }
 0x3a9   :  { %602 = vmatpush.msra.mxu3 %v586_v5 }
 0x3e6   :  { %v264_v63 = vpop.permute.xlu2 %263 }
 0x3e7   :  { %v266_v0 = vmul.f32 %v264_v63, %v260_v62 }
 0x3e9   :  { %268 = vrot.lane.b32.xlu2 %v266_v0, %s804_s26 }
 0x443   :  { %v269_v1 = vpop.permute.xlu2 %268 }
 0x444   :  { %v271_v2 = vadd.f32 %v269_v1, %v242_v49 }
 0x446   :  { %690 = vtanh.f32 %v271_v2 }
 0x44c   :  { %v691_v3 = vpop.eup %690 }
 0x44d   :  { %275 = vrot.lane.b32.xlu0 %v691_v3, %s805_s27 }
 0x4bf   :  { %v276_v7 = vpop.permute.xlu0 %275 }
 0x4c0   :  { %v278_v9 = vmul.f32 %v276_v7, %v273_v6  ;;  %v585_v6 = vld [vmem:[#allocation6 + $0xc8] sm:$0xff]  ;;  %v584_v7 = vld [vmem:[#allocation6 + $0xc0] sm:$0xff] }
 0x4c1   :  { %603 = vmatpush.msra.mxu3 %v585_v6 }
 0x4c2   :  { %v283_v10 = vadd.f32 %v282_v8, %v278_v9 }
 0x4c3   :  { %604 = vmatpush.msra.mxu3 %v584_v7 }
 0x4c4   :  { %285 = vrot.lane.b32.xlu2 %v283_v10, %s805_s27 }
 0x51e   :  { %v286_v11 = vpop.permute.xlu2 %285 }
 0x51f   :  { %663 = vmatmul.msk.f32.vlgmr.msrb.gmra.mxu1 %vm56_vm0, %v286_v11 }
 0x59c   :  { %v306_v13 = vpop.f32.mrf.mxu1 }
 0x59d   :  { %v309_v14 = vadd.f32 %v306_v13, %v867_v12 }
 0x59f   :  { %v310_v15 = vadd.f32 %v309_v14, %v858_v46 }
 0x5a1   :  { %331 = vrot.lane.b32.xlu1 %v310_v15, %s803_s25  ;;  %v664_v16 = vmul.f32 -1.442695, %v310_v15 }
 0x5a3   :  { %692 = vpow2.f32 %v664_v16 }
 0x5a9   :  { %v693_v17 = vpop.eup %692 }
 0x5aa   :  { %v314_v18 = vadd.f32 1.0, %v693_v17  ;;  %v474_v17 = vrot.slane %v858_v46, 7 }
 0x5ac   :  { %694 = vrcp.f32 %v314_v18  ;;  %v326_v24 = vand.u32 2147483648, %v314_v18  ;;  %vm320_vm12 = vweird.f32 %v314_v18  ;;  %v324_v25 = vand.u32 2147483647, %v314_v18 }
 0x5ae   :  { %v327_v27 = vor.u32 1.1754944e-38, %v326_v24  ;;  %vm325_vm14 = vcmp.eq.f32.partialorder %v324_v25, 8.507059e+37 }
 0x5b2   :  { %v695_v19 = vpop.eup %694 }
 0x5b3   :  { %v316_v20 = vmul.f32 %v695_v19, %v314_v18  ;;  %vm321_vm11 = vweird.f32 %v695_v19 }
 0x5b4   :  { %vm322_vm13 = vmor %vm320_vm12, %vm321_vm11 }
 0x5b5   :  { %v317_v21 = vsub.f32 1.0, %v316_v20 }
 0x5b7   :  { %v318_v22 = vmul.f32 %v695_v19, %v317_v21 }
 0x5b9   :  { %v319_v23 = vadd.f32 %v695_v19, %v318_v22 }
 0x5bb   :  { %v323_v26 = vsel %vm322_vm13, %v695_v19, %v319_v23  ;;  %vm630_vm13 = vcmask 523264  }
 0x5bc   :  { %v328_v29 = vsel %vm325_vm14, %v327_v27, %v323_v26  ;;  %vm632_vm14 = vcmask 785408  }
 0x5bd   :  { %v341_v35 = vsub.f32 1.0, %v328_v29  ;;  %v347_v37 = vmul.f32 %v328_v29, %v283_v10 }
 0x613   :  { %v332_v28 = vpop.permute.xlu1 %331 }
 0x614   :  { %v334_v30 = vmul.f32 %v332_v28, %v328_v29 }
 0x616   :  { %336 = vrot.lane.b32.xlu2 %v334_v30, %s804_s26 }
 0x670   :  { %v337_v32 = vpop.permute.xlu2 %336 }
 0x671   :  { %v339_v33 = vadd.f32 %v337_v32, %v310_v15 }
 0x673   :  { %696 = vtanh.f32 %v339_v33 }
 0x679   :  { %v697_v34 = vpop.eup %696 }
 0x67a   :  { %343 = vrot.lane.b32.xlu1 %v697_v34, %s805_s27 }
 0x6ec   :  { %v344_v36 = vpop.permute.xlu1 %343 }
 0x6ed   :  { %v346_v38 = vmul.f32 %v344_v36, %v341_v35 }
 0x6ef   :  { %v348_v39 = vadd.f32 %v347_v37, %v346_v38 }
 0x6f1   :  { %v350_v40 = vrot.slane %v348_v39, 7  ;;  %380 = vrot.lane.b32.xlu0 %v348_v39, %s805_s27 }
 0x6f3   :  { %v353_v41 = vsel %vm352_vm15, %v283_v10, %v350_v40  ;;  %vm634_vm15 = vcmask 850944  }
 0x6f4   :  { %v354_v42 = vmax.f32 %v353_v41, 0.0 }
 0x6f6   :  { %356 = vrot.lane.b32.xlu2 %v354_v42, %s805_s27 }
 0x750   :  { %v357_v43 = vpop.permute.xlu2 %356 }
 0x751   :  { %665 = vmatmul.msk.f32.vlgmr.msrb.gmra.mxu3 %vm56_vm0, %v357_v43 }
 0x763   :  { %v381_v44 = vpop.permute.xlu0 %380 }
 0x764   :  { %666 = vmatmul.msk.f32.vlgmr.msra.gmra.mxu2 %vm56_vm0, %v381_v44 }
 0x7d4   :  { %v377_v45 = vpop.f32.mrf.mxu3 }
 0x7e7   :  { %v401_v47 = vpop.f32.mrf.mxu2 }
 0x7e8   :  { %v404_v48 = vadd.f32 %v401_v47, %v377_v45  ;;  %v588_v47 = vld [vmem:[#allocation6 + $0xe1] sm:$0x1] }
 0x7ea   :  { %v405_v49 = vadd.f32 %v404_v48, %v858_v46 }
 0x7ec   :  { %426 = vrot.lane.b32.xlu1 %v405_v49, %s803_s25  ;;  %v667_v50 = vmul.f32 -1.442695, %v405_v49 }
 0x7ee   :  { %698 = vpow2.f32 %v667_v50 }
 0x7f4   :  { %v699_v51 = vpop.eup %698 }
 0x7f5   :  { %v409_v52 = vadd.f32 1.0, %v699_v51 }
 0x7f7   :  { %700 = vrcp.f32 %v409_v52  ;;  %v421_v58 = vand.u32 2147483648, %v409_v52  ;;  %vm415_vm2 = vweird.f32 %v409_v52  ;;  %v419_v59 = vand.u32 2147483647, %v409_v52 }
 0x7f9   :  { %v422_v61 = vor.u32 1.1754944e-38, %v421_v58  ;;  %vm420_vm4 = vcmp.eq.f32.partialorder %v419_v59, 8.507059e+37 }
 0x7fd   :  { %v701_v53 = vpop.eup %700 }
 0x7fe   :  { %v411_v54 = vmul.f32 %v701_v53, %v409_v52  ;;  %vm416_vm1 = vweird.f32 %v701_v53 }
 0x7ff   :  { %vm417_vm3 = vmor %vm415_vm2, %vm416_vm1 }
 0x800   :  { %v412_v55 = vsub.f32 1.0, %v411_v54 }
 0x802   :  { %v413_v56 = vmul.f32 %v701_v53, %v412_v55 }
 0x804   :  { %v414_v57 = vadd.f32 %v701_v53, %v413_v56 }
 0x806   :  { %v418_v60 = vsel %vm417_vm3, %v701_v53, %v414_v57 }
 0x807   :  { %v423_v63 = vsel %vm420_vm4, %v422_v61, %v418_v60 }
 0x808   :  { %v436_v8 = vsub.f32 1.0, %v423_v63  ;;  %v442_v10 = vmul.f32 %v423_v63, %v348_v39 }
 0x85e   :  { %v427_v62 = vpop.permute.xlu1 %426 }
 0x85f   :  { %v429_v0 = vmul.f32 %v427_v62, %v423_v63 }
 0x861   :  { %431 = vrot.lane.b32.xlu2 %v429_v0, %s804_s26 }
 0x8bb   :  { %v432_v1 = vpop.permute.xlu2 %431 }
 0x8bc   :  { %v434_v2 = vadd.f32 %v432_v1, %v405_v49 }
 0x8be   :  { %702 = vtanh.f32 %v434_v2 }
 0x8c4   :  { %v703_v3 = vpop.eup %702 }
 0x8c5   :  { %438 = vrot.lane.b32.xlu0 %v703_v3, %s805_s27 }
 0x937   :  { %v439_v9 = vpop.permute.xlu0 %438 }
 0x938   :  { %v441_v11 = vmul.f32 %v439_v9, %v436_v8 }
 0x93a   :  { %v443_v13 = vadd.f32 %v442_v10, %v441_v11 }
 0x93c   :  { %445 = vrot.lane.b32.xlu1 %v443_v13, %s805_s27  ;;  %v513_v32 = vrot.slane %v443_v13, 7 }
 0x9ae   :  { %v446_v14 = vpop.permute.xlu1 %445 }
 0x9af   :  { %668 = vmatmul.msk.f32.vlgmr.msra.gmra.mxu0 %vm56_vm0, %v446_v14  ;;  %672 = vmatmul.msk.f32.vlgmr.msra.gmra.mxu3 %vm56_vm0, %v446_v14 }
 0xa2c   :  { %v466_v15 = vpop.f32.mrf.mxu0 }
 0xa2d   :  { %v470_v16 = vrot.slane %v466_v15, 7 }
 0xa2f   :  { %v472_v18 = vadd.f32 %v470_v16, %v377_v45 }
 0xa31   :  { %v476_v19 = vadd.f32 %v474_v17, %v472_v18 }
 0xa32   :  { %v606_v48 = vpop.f32.mrf.mxu3 }
 0xa33   :  { %v669_v20 = vmul.f32 -1.442695, %v476_v19  ;;  %497 = vrot.lane.b32.xlu2 %v476_v19, %s803_s25  ;;  %v890_v49 = vadd.f32 %v606_v48, %v588_v47 }
 0xa35   :  { %704 = vpow2.f32 %v669_v20  ;;  %v610_v50 = vsel %vm609_vm9, %v890_v49, -inf }
 0xa3b   :  { %v705_v21 = vpop.eup %704 }
 0xa3c   :  { %v480_v22 = vadd.f32 1.0, %v705_v21 }
 0xa3e   :  { %706 = vrcp.f32 %v480_v22  ;;  %v492_v26 = vand.u32 2147483648, %v480_v22  ;;  %v490_v28 = vand.u32 2147483647, %v480_v22  ;;  %vm486_vm6 = vweird.f32 %v480_v22 }
 0xa40   :  { %v493_v30 = vor.u32 1.1754944e-38, %v492_v26  ;;  %vm491_vm8 = vcmp.eq.f32.partialorder %v490_v28, 8.507059e+37 }
 0xa44   :  { %v707_v23 = vpop.eup %706 }
 0xa45   :  { %v482_v24 = vmul.f32 %v707_v23, %v480_v22  ;;  %vm487_vm5 = vweird.f32 %v707_v23 }
 0xa46   :  { %vm488_vm7 = vmor %vm486_vm6, %vm487_vm5 }
 0xa47   :  { %v483_v25 = vsub.f32 1.0, %v482_v24 }
 0xa49   :  { %v484_v27 = vmul.f32 %v707_v23, %v483_v25 }
 0xa4b   :  { %v485_v29 = vadd.f32 %v707_v23, %v484_v27 }
 0xa4d   :  { %v489_v33 = vsel %vm488_vm7, %v707_v23, %v485_v29 }
 0xa4e   :  { %v494_v34 = vsel %vm491_vm8, %v493_v30, %v489_v33 }
 0xa4f   :  { %v515_v35 = vmul.f32 %v513_v32, %v494_v34  ;;  %v507_v41 = vsub.f32 1.0, %v494_v34 }
 0xa8d   :  { %v498_v36 = vpop.permute.xlu2 %497 }
 0xa8e   :  { %v500_v37 = vmul.f32 %v498_v36, %v494_v34 }
 0xa90   :  { %502 = vrot.lane.b32.xlu0 %v500_v37, %s804_s26 }
 0xb02   :  { %v503_v38 = vpop.permute.xlu0 %502 }
 0xb03   :  { %v505_v39 = vadd.f32 %v503_v38, %v476_v19 }
 0xb05   :  { %708 = vtanh.f32 %v505_v39 }
 0xb0b   :  { %v709_v40 = vpop.eup %708 }
 0xb0c   :  { %509 = vrot.lane.b32.xlu1 %v709_v40, %s805_s27 }
 0xb7e   :  { %v510_v42 = vpop.permute.xlu1 %509 }
 0xb7f   :  { %v512_v43 = vmul.f32 %v510_v42, %v507_v41 }
 0xb81   :  { %v516_v44 = vadd.f32 %v515_v35, %v512_v43 }
 0xb83   :  { %v518_v45 = vrot.slane %v516_v44, 1 }
 0xb85   :  { %519 = vrot.lane.b32.xlu2 %v518_v45, %s805_s27 }
 0xbae   :  { %611 = vmax.xlane.f32.xlu2 %v610_v50 }
 0xbdf   :  { %v520_v51 = vpop.permute.xlu2 %519 }
 0xbe0   :  { %670 = vmatmul.msk.f32.vlgmr.msra.gmra.mxu1 %vm56_vm0, %v520_v51 }
 0xc21   :  { %v612_v4 = vpop.xlane.xlu2 %611 }
 0xc22   :  { %v613_v5 = vsub.f32 %v890_v49, %v612_v4 }
 0xc24   :  { %v614_v6 = vmul.f32 1.442695, %v613_v5 }
 0xc5d   :  { %v540_v52 = vpop.f32.mrf.mxu1 }
 0xc5e   :  { %v543_v53 = vadd.f32 %v540_v52, %v867_v12 }
 0xc60   :  { %v544_v54 = vadd.f32 %v543_v53, %v858_v46 }
 0xc62   :  { %565 = vrot.lane.b32.xlu0 %v544_v54, %s803_s25  ;;  %v671_v55 = vmul.f32 -1.442695, %v544_v54 }
 0xc64   :  { %710 = vpow2.f32 %v671_v55 }
 0xc6a   :  { %v711_v56 = vpop.eup %710 }
 0xc6b   :  { %v548_v57 = vadd.f32 1.0, %v711_v56 }
 0xc6d   :  { %712 = vrcp.f32 %v548_v57  ;;  %v560_v63 = vand.u32 2147483648, %v548_v57  ;;  %vm554_vm0 = vweird.f32 %v548_v57  ;;  %v558_v0 = vand.u32 2147483647, %v548_v57 }
 0xc6e   :  { %714 = vpow2.f32 %v614_v6 }
 0xc6f   :  { %v561_v1 = vor.u32 1.1754944e-38, %v560_v63  ;;  %vm559_vm12 = vcmp.eq.f32.partialorder %v558_v0, 8.507059e+37 }
 0xc73   :  { %v713_v58 = vpop.eup %712 }
 0xc74   :  { %v550_v59 = vmul.f32 %v713_v58, %v548_v57  ;;  %vm555_vm10 = vweird.f32 %v713_v58  ;;  %v715_v7 = vpop.eup %714 }
 0xc75   :  { %vm556_vm11 = vmor %vm554_vm0, %vm555_vm10  ;;  %v616_v8 = vsel %vm609_vm9, %v715_v7, 0.0 }
 0xc76   :  { %v551_v60 = vsub.f32 1.0, %v550_v59 }
 0xc78   :  { %v552_v61 = vmul.f32 %v713_v58, %v551_v60 }
 0xc7a   :  { %v553_v62 = vadd.f32 %v713_v58, %v552_v61 }
 0xc7c   :  { %v557_v12 = vsel %vm556_vm11, %v713_v58, %v553_v62 }
 0xc7d   :  { %v562_v2 = vsel %vm559_vm12, %v561_v1, %v557_v12 }
 0xc7e   :  { %v575_v13 = vsub.f32 1.0, %v562_v2  ;;  %v582_v15 = vmul.f32 %v562_v2, %v518_v45 }
 0xcd4   :  { %v566_v46 = vpop.permute.xlu0 %565 }
 0xcd5   :  { %v568_v3 = vmul.f32 %v566_v46, %v562_v2 }
 0xcd7   :  { %570 = vrot.lane.b32.xlu1 %v568_v3, %s804_s26 }
 0xd01   :  { %617 = vadd.xlane.f32.xlu1 %v616_v8 }
 0xd49   :  { %v571_v9 = vpop.permute.xlu1 %570 }
 0xd4a   :  { %v573_v10 = vadd.f32 %v571_v9, %v544_v54 }
 0xd4c   :  { %716 = vtanh.f32 %v573_v10 }
 0xd52   :  { %v717_v11 = vpop.eup %716 }
 0xd53   :  { %577 = vrot.lane.b32.xlu0 %v717_v11, %s805_s27 }
 0xd74   :  { %v618_v18 = vpop.xlane.xlu1 %617 }
 0xd75   :  { %718 = vlog2.f32 %v618_v18 }
 0xd7b   :  { %v719_v19 = vpop.eup %718 }
 0xd7c   :  { %v620_v20 = vmul.f32 0.6931472, %v719_v19 }
 0xd7e   :  { %v621_v22 = vadd.f32 %v620_v20, %v612_v4 }
 0xd80   :  { %v622_v23 = vsub.f32 %v890_v49, %v621_v22 }
 0xdc5   :  { %v578_v14 = vpop.permute.xlu0 %577 }
 0xdc6   :  { %v580_v16 = vmul.f32 %v578_v14, %v575_v13 }
 0xdc8   :  { %v583_v17 = vadd.f32 %v582_v15, %v580_v16 }
 0xdca   :  { %624 = vrot.lane.b32.xlu0 %v583_v17, %s803_s25 }
 0xdd2   :  { %627 = vrot.lane.b32.xlu0 %v848_v31, %s805_s27 }
 0xe3c   :  { %v625_v21 = vpop.permute.xlu0 %624 }
 0xe3d   :  { %v631_v24 = vsel %vm630_vm13, %v622_v23, %v625_v21 }
 0xe44   :  { %v628_v25 = vpop.permute.xlu0 %627 }
 0xe45   :  { %v633_v31 = vsel %vm632_vm14, %v631_v24, %v628_v25 }
 0xe46   :  { %v635_v26 = vsel %vm634_vm15, %v633_v31, 0.0 }
 0xe47   :  { %636 = vst [vmem:[#allocation8] sm:$0x1] %v635_v26 }
 0xe48   :  { %647 = dma.vmem_to_hbm [thread:$0]  %s643_s29, 16, %s645_s5, [#allocation5]  }
 0xe49   :  { %796 = dma.done.wait [#allocation5], 16  }
 0xe4a   :  { %797 = vsyncadd [#allocation5], 4294967280 }
 0xe4b   :  { %652 = vsyncpa [#allocation4], 1 }
 0xe4c   :  { %653 = vsyncpa [#allocation7], 1 }
 0xe4d   :  { %654 = vsyncpa [#allocation5], 1 }

</bundles_post_ra>
